<compile_context>
chip_gen: v6e
topology: v6e:2x2x1
jax: 0.10.0
libtpu: 0.0.40
codegen_flags: <defaults>
</compile_context>

<pallas_src>
import functools

import jax
import jax.numpy as jnp
from jax.experimental import pallas as pl
from jax.experimental.pallas import tpu as pltpu


# ---------------------------------------------------------------------------
# Generation-aware VMEM configuration
# ---------------------------------------------------------------------------
@functools.lru_cache(maxsize=1)
def _vmem_config():
    """Returns (tile_budget_bytes, vmem_limit_bytes, tq_cap, attn_buffers)."""
    vmem_cap = None
    try:
        vmem_cap = int(pltpu.get_tpu_info().vmem_capacity_bytes)
    except Exception:
        vmem_cap = None
    if vmem_cap is not None and vmem_cap >= 96 * 1024 * 1024:
        # v5e / v6e class: 128 MiB physical VMEM -> big tiles, deep buffering.
        return 56 * 1024 * 1024, 100 * 1024 * 1024, 1024, 3
    # v7x class (64 MiB per TensorCore) or unknown backend: stay conservative.
    return 15 * 1024 * 1024, 40 * 1024 * 1024, 512, 2


def _maybe_buffered_spec(block_shape, index_map, n_buffers):
    """BlockSpec with deeper pipelining when requested and supported."""
    if n_buffers > 2 and hasattr(pl, "Buffered"):
        try:
            return pl.BlockSpec(block_shape, index_map,
                                pipeline_mode=pl.Buffered(n_buffers))
        except TypeError:
            pass
    return pl.BlockSpec(block_shape, index_map)


# ---------------------------------------------------------------------------
# Kernel
# ---------------------------------------------------------------------------
def _make_sdpa_kernel(temperature: float, use_mask: bool, approx_recip: bool):
    """Builds the attention kernel for one (TB, TH, TQ, Lk) block."""
    inv_t = 1.0 / float(temperature)

    def kernel(*refs):
        if use_mask:
            q_ref, k_ref, v_ref, m_ref, out_ref, attn_ref = refs
        else:
            q_ref, k_ref, v_ref, out_ref, attn_ref = refs
            m_ref = None

        tb, th, tq, dk = q_ref.shape
        lk = k_ref.shape[2]
        dv = v_ref.shape[3]
        bh = tb * th

        # Keep the native dtype (bf16 inputs hit the MXU at full rate; f32
        # accumulation is requested via preferred_element_type).
        q = q_ref[...]
        k = k_ref[...]
        v = v_ref[...]

        # Scale q once (cheaper than scaling the [tq, lk] scores).
        qs = q * jnp.asarray(inv_t, dtype=q.dtype)

        # (q / T) @ k^T, contraction on the last axis of both operands — lowers
        # to a batched dot_general on the MXU with no materialized transpose.
        scores = jnp.einsum(
            "bqd,bkd->bqk",
            qs.reshape(bh, tq, dk),
            k.reshape(bh, lk, dk),
            preferred_element_type=jnp.float32,
        )  # [bh, tq, lk] f32

        if use_mask:
            m = m_ref[...]  # [tb, 1 or th, tq, lk] int8 (0/1)
            s4 = scores.reshape(tb, th, tq, lk)
            # Exact for 0/1 masks: attn*mask + (1-mask)*(-1e9) == where(...)
            s4 = jnp.where(m != 0, s4, jnp.float32(-1000000000.0))
            scores = s4.reshape(bh, tq, lk)

        # Numerically-stable softmax over the key axis.
        scores = scores - jnp.max(scores, axis=-1, keepdims=True)
        e = jnp.exp(scores)
        denom = jnp.sum(e, axis=-1, keepdims=True)
        # approx reciprocal rides the otherwise-idle EUP slot; only used for
        # bf16 inputs so the f32 path stays bit-faithful to the reference.
        attn = e * pl.reciprocal(denom, approx=approx_recip)

        # attn @ v, feeding the MXU in v's dtype, accumulating in f32.
        out = jnp.einsum(
            "bqk,bkd->bqd",
            attn.astype(v.dtype),
            v.reshape(bh, lk, dv),
            preferred_element_type=jnp.float32,
        )  # [bh, tq, dv]

        attn_ref[...] = attn.reshape(tb, th, tq, lk).astype(attn_ref.dtype)
        out_ref[...] = out.reshape(tb, th, tq, dv).astype(out_ref.dtype)

    return kernel


# ---------------------------------------------------------------------------
# Tile selection
# ---------------------------------------------------------------------------
def _pick_tiles(B, H, Lq, Lk, Dk, Dv, in_bytes, mask_bytes, use_mask,
                head_bcast_mask, budget_bytes, tq_cap, attn_buffers,
                min_steps=2):
    """Choose (TB, TH, TQ) so the per-step working set (pipeline buffers plus
    all live [tq, Lk] intermediates) stays within budget_bytes.  Lk is never
    tiled because the full attention row is both needed for softmax and
    returned."""

    def divisors_desc(n):
        return [d for d in range(n, 0, -1) if n % d == 0]

    # Query-tile alignment: bf16 packs (16, 128) sublane tiles, int8 (32, 128).
    sub = {1: 32, 2: 16}.get(in_bytes, 8)
    tq_cands = [d for d in divisors_desc(Lq) if d % sub == 0 and d <= tq_cap]
    if Lq <= tq_cap and Lq not in tq_cands:
        tq_cands.insert(0, Lq)          # full axis is always a legal block dim
    if not tq_cands:
        tq_cands = [Lq]

    def step_bytes(tb, th, tq):
        thm = 1 if head_bcast_mask else th
        bh = tb * th
        b = 0
        b += 2 * bh * tq * Dk * in_bytes                 # q block (double buf)
        b += 2 * bh * Lk * Dk * in_bytes                 # k block
        b += 2 * bh * Lk * Dv * in_bytes                 # v block
        if use_mask:
            b += 2 * tb * thm * tq * Lk * mask_bytes     # mask block (int8)
        b += 2 * bh * tq * Dv * in_bytes                 # out block
        b += attn_buffers * bh * tq * Lk * in_bytes      # attn block
        # Live in-kernel intermediates: f32 scores / exp / probs, the
        # low-precision attn copies (2nd matmul operand + writeback cast) and
        # the mask-select temporary.
        slab = bh * tq * Lk
        b += slab * (3 * 4 + 2 * in_bytes + (4 if use_mask else 0))
        b += bh * tq * Dv * 4                            # f32 output accum
        return b

    best = None
    for tq in tq_cands:
        for th in divisors_desc(H):
            for tb in divisors_desc(B):
                if step_bytes(tb, th, tq) > budget_bytes:
                    continue
                steps = (B // tb) * (H // th) * (Lq // tq)
                # Preference: keep >= min_steps grid iterations (so both v7x
                # TensorCores get work), then fewest steps, then the largest
                # query tile, then the largest batch*head tile (so TB*TH is
                # what shrinks first when VMEM is tight).
                key = (0 if steps >= min_steps else 1, steps, -tq, -(tb * th))
                if best is None or key < best[1]:
                    best = ((tb, th, tq), key)
    if best is None:
        # Nothing fits the budget (very long Lk): smallest tile, rely on the
        # raised vmem_limit_bytes.
        # TODO(synk): a flash-style (online-softmax, Lk-tiled) variant would
        # remove this limitation for callers that do not need the attn matrix.
        return 1, 1, min(tq_cands)
    return best[0]


# ---------------------------------------------------------------------------
# pallas_call wrapper
# ---------------------------------------------------------------------------
@functools.partial(jax.jit, static_argnames=("temperature",))
def _sdpa_pallas(q, k, v, mask, *, temperature):
    """q,k,v: [B,H,L,D]; mask: [B, 1 or H, Lq, Lk] int8 or None."""
    B, H, Lq, Dk = q.shape
    Lk = k.shape[2]
    Dv = v.shape[3]
    use_mask = mask is not None
    head_bcast_mask = (not use_mask) or mask.shape[1] == 1

    in_bytes = q.dtype.itemsize
    mask_bytes = mask.dtype.itemsize if use_mask else 0

    budget, vmem_limit, tq_cap, attn_buffers = _vmem_config()

    TB, TH, TQ = _pick_tiles(B, H, Lq, Lk, Dk, Dv, in_bytes, mask_bytes,
                             use_mask, head_bcast_mask, budget, tq_cap,
                             attn_buffers)

    approx_recip = q.dtype == jnp.bfloat16
    kernel = _make_sdpa_kernel(float(temperature), use_mask, approx_recip)

    grid = (B // TB, H // TH, Lq // TQ)

    in_specs = [
        pl.BlockSpec((TB, TH, TQ, Dk), lambda bi, hi, qi: (bi, hi, qi, 0)),  # q
        pl.BlockSpec((TB, TH, Lk, Dk), lambda bi, hi, qi: (bi, hi, 0, 0)),   # k
        pl.BlockSpec((TB, TH, Lk, Dv), lambda bi, hi, qi: (bi, hi, 0, 0)),   # v
    ]
    operands = [q, k, v]
    if use_mask:
        if head_bcast_mask:
            mask_spec = pl.BlockSpec((TB, 1, TQ, Lk),
                                     lambda bi, hi, qi: (bi, 0, qi, 0))
        else:
            mask_spec = pl.BlockSpec((TB, TH, TQ, Lk),
                                     lambda bi, hi, qi: (bi, hi, qi, 0))
        in_specs.append(mask_spec)
        operands.append(mask)

    out_shape = (
        jax.ShapeDtypeStruct((B, H, Lq, Dv), q.dtype),   # output
        jax.ShapeDtypeStruct((B, H, Lq, Lk), q.dtype),   # attention weights
    )
    out_specs = (
        pl.BlockSpec((TB, TH, TQ, Dv), lambda bi, hi, qi: (bi, hi, qi, 0)),
        # The attn writeback is the dominant HBM stream; buffer it deeper on
        # chips with the VMEM headroom for it.
        _maybe_buffered_spec((TB, TH, TQ, Lk),
                             lambda bi, hi, qi: (bi, hi, qi, 0),
                             attn_buffers),
    )

    return pl.pallas_call(
        kernel,
        out_shape=out_shape,
        grid_spec=pltpu.PrefetchScalarGridSpec(
            num_scalar_prefetch=0,
            grid=grid,
            in_specs=in_specs,
            out_specs=out_specs,
        ),
        compiler_params=pltpu.CompilerParams(
            dimension_semantics=("parallel", "parallel", "parallel"),
            vmem_limit_bytes=vmem_limit,
        ),
    )(*operands)


def scaled_dot_product_attention(q, k, v, mask=None, *, temperature):
    """Matches ScaledDotProductAttention.forward (attn_dropout=0.0).

    q: [B, H, Lq, Dk], k: [B, H, Lk, Dk], v: [B, H, Lk, Dv]
    mask (optional): [B, 1, Lq, Lk] / [B, H, Lq, Lk] / [B, Lq, Lk] (0/1 mask)
    returns (output [B, H, Lq, Dv], attn [B, H, Lq, Lk])
    """
    B, H, Lq, _ = q.shape
    Lk = k.shape[2]

    m = None
    if mask is not None:
        m = jnp.asarray(mask)
        if m.ndim == 3:              # [B, Lq, Lk] -> [B, 1, Lq, Lk]
            m = m[:, None]
        Hm = H if m.shape[1] == H else 1
        # Ship the mask to the kernel as int8 (the kernel only tests != 0):
        # it is the second-largest O(Lq*Lk) HBM stream, and this cuts its DMA
        # and VMEM footprint 4x vs f32.  The head axis is kept at 1 when the
        # mask is head-broadcast to avoid DMAing H identical copies.
        m = (m != 0).astype(jnp.int8)
        m = jnp.broadcast_to(m, (B, Hm, Lq, Lk))

    return _sdpa_pallas(q, k, v, m, temperature=float(temperature))


def _reference(q, k, v, mask, temperature):
    """Pure-JAX reference mirroring the PyTorch code (full-precision matmuls)."""
    attn = jnp.matmul(q / temperature, jnp.swapaxes(k, 2, 3),
                      precision=jax.lax.Precision.HIGHEST)
    if mask is not None:
        bias = (1 - mask) * -1000000000.0
        attn = attn * mask + bias
    attn = jax.nn.softmax(attn, axis=-1)
    out = jnp.matmul(attn, v, precision=jax.lax.Precision.HIGHEST)
    return out, attn


if __name__ == "__main__":
    # Small shapes consistent with the module: batch=2, heads=2, seq=8, d_k=d_v=16.
    B, H, Lq, Lk, Dk, Dv = 2, 2, 8, 8, 16, 16
    temperature = float(Dk) ** 0.5

    key = jax.random.PRNGKey(0)
    kq, kk, kv, km = jax.random.split(key, 4)
    q = jax.random.normal(kq, (B, H, Lq, Dk), dtype=jnp.float32)
    k = jax.random.normal(kk, (B, H, Lk, Dk), dtype=jnp.float32)
    v = jax.random.normal(kv, (B, H, Lk, Dv), dtype=jnp.float32)
    # 0/1 mask, broadcast over heads (PyTorch-style [B, 1, Lq, Lk]).
    mask = (jax.random.uniform(km, (B, 1, Lq, Lk)) > 0.3).astype(jnp.float32)

    out, attn = scaled_dot_product_attention(q, k, v, mask, temperature=temperature)
    jax.block_until_ready((out, attn))

    ref_out, ref_attn = _reference(q, k, v, mask, temperature)
    assert jnp.allclose(out, ref_out, atol=2e-5, rtol=2e-5)
    assert jnp.allclose(attn, ref_attn, atol=2e-5, rtol=2e-5)

    # Also exercise the mask=None path.
    out2, attn2 = scaled_dot_product_attention(q, k, v, None, temperature=temperature)
    jax.block_until_ready((out2, attn2))
    ref_out2, ref_attn2 = _reference(q, k, v, None, temperature)
    assert jnp.allclose(out2, ref_out2, atol=2e-5, rtol=2e-5)
    assert jnp.allclose(attn2, ref_attn2, atol=2e-5, rtol=2e-5)

    print("KERNEL_OK")
</pallas_src>

<mosaic_0001>
module attributes {stable_mosaic.version = 11 : i64} {
  func.func @kernel(%arg0: i32, %arg1: i32, %arg2: i32, %arg3: memref<1x2x8x16xf32, #tpu.memory_space<vmem>>, %arg4: memref<1x2x8x16xf32, #tpu.memory_space<vmem>>, %arg5: memref<1x2x8x16xf32, #tpu.memory_space<vmem>>, %arg6: memref<1x1x8x8xi8, #tpu.memory_space<vmem>>, %arg7: memref<1x2x8x16xf32, #tpu.memory_space<vmem>>, %arg8: memref<1x2x8x8xf32, #tpu.memory_space<vmem>>) attributes {dimension_semantics = [#tpu.dimension_semantics<parallel>, #tpu.dimension_semantics<parallel>, #tpu.dimension_semantics<parallel>], iteration_bounds = array<i64: 2, 1, 1>, scalar_prefetch = 0 : i64, scratch_operands = 0 : i64, tpu.core_type = #tpu.core_type<tc>, window_params = [{transform_indices = @transform_0, window_bounds = array<i64: 1, 2, 8, 16>}, {transform_indices = @transform_1, window_bounds = array<i64: 1, 2, 8, 16>}, {transform_indices = @transform_2, window_bounds = array<i64: 1, 2, 8, 16>}, {transform_indices = @transform_3, window_bounds = array<i64: 1, 1, 8, 8>}, {transform_indices = @transform_4, window_bounds = array<i64: 1, 2, 8, 16>}, {transform_indices = @transform_5, window_bounds = array<i64: 1, 2, 8, 8>}]} {
    %c0 = arith.constant 0 : index
    %c0_0 = arith.constant 0 : index
    %c0_1 = arith.constant 0 : index
    %c0_2 = arith.constant 0 : index
    %0 = vector.load %arg3[%c0, %c0_0, %c0_1, %c0_2] : memref<1x2x8x16xf32, #tpu.memory_space<vmem>>, vector<1x2x8x16xf32>
    %c0_3 = arith.constant 0 : index
    %c0_4 = arith.constant 0 : index
    %c0_5 = arith.constant 0 : index
    %c0_6 = arith.constant 0 : index
    %1 = vector.load %arg4[%c0_3, %c0_4, %c0_5, %c0_6] : memref<1x2x8x16xf32, #tpu.memory_space<vmem>>, vector<1x2x8x16xf32>
    %c0_7 = arith.constant 0 : index
    %c0_8 = arith.constant 0 : index
    %c0_9 = arith.constant 0 : index
    %c0_10 = arith.constant 0 : index
    %2 = vector.load %arg5[%c0_7, %c0_8, %c0_9, %c0_10] : memref<1x2x8x16xf32, #tpu.memory_space<vmem>>, vector<1x2x8x16xf32>
    %cst = arith.constant 2.500000e-01 : f32
    %3 = vector.broadcast %cst : f32 to vector<1x2x8x16xf32>
    %4 = arith.mulf %0, %3 : vector<1x2x8x16xf32>
    %5 = vector.shape_cast %4 : vector<1x2x8x16xf32> to vector<2x8x16xf32>
    %6 = vector.shape_cast %1 : vector<1x2x8x16xf32> to vector<2x8x16xf32>
    "tpu.trace_start"() <{level = 10 : i32, message = "bqd,bkd->bqk"}> : () -> ()
    %cst_11 = arith.constant dense<0.000000e+00> : vector<2x8x8xf32>
    %7 = tpu.matmul %5, %6, %cst_11 {dimension_numbers = #tpu.dot_dimension_numbers<[2], [2], [1], [1], [0, 0, 0, 1, 1, 1], [0], [0]>} : vector<2x8x16xf32>, vector<2x8x16xf32>, vector<2x8x8xf32> -> vector<2x8x8xf32>
    "tpu.trace_stop"() : () -> ()
    %c0_12 = arith.constant 0 : index
    %c0_13 = arith.constant 0 : index
    %c0_14 = arith.constant 0 : index
    %c0_15 = arith.constant 0 : index
    %8 = vector.load %arg6[%c0_12, %c0_13, %c0_14, %c0_15] : memref<1x1x8x8xi8, #tpu.memory_space<vmem>>, vector<1x1x8x8xi8>
    %9 = vector.shape_cast %7 : vector<2x8x8xf32> to vector<1x2x8x8xf32>
    %c0_i8 = arith.constant 0 : i8
    %10 = vector.broadcast %c0_i8 : i8 to vector<1x1x8x8xi8>
    %11 = arith.cmpi ne, %8, %10 : vector<1x1x8x8xi8>
    %cst_16 = arith.constant -1.000000e+09 : f32
    %12 = vector.shape_cast %11 : vector<1x1x8x8xi1> to vector<1x1x8x8xi1>
    %13 = vector.broadcast %12 : vector<1x1x8x8xi1> to vector<1x2x8x8xi1>
    %14 = vector.broadcast %cst_16 : f32 to vector<1x2x8x8xf32>
    %15 = arith.select %13, %9, %14 : vector<1x2x8x8xi1>, vector<1x2x8x8xf32>
    %16 = vector.shape_cast %15 : vector<1x2x8x8xf32> to vector<2x8x8xf32>
    %cst_17 = arith.constant dense<0xFF800000> : vector<2x8xf32>
    %17 = vector.multi_reduction <maximumf>, %16, %cst_17 [2] : vector<2x8x8xf32> to vector<2x8xf32>
    %18 = vector.shape_cast %17 : vector<2x8xf32> to vector<2x8x1xf32>
    %19 = vector.broadcast %18 : vector<2x8x1xf32> to vector<2x8x8xf32>
    %20 = arith.subf %16, %19 : vector<2x8x8xf32>
    %21 = math.exp %20 : vector<2x8x8xf32>
    %cst_18 = arith.constant dense<0.000000e+00> : vector<2x8xf32>
    %22 = vector.multi_reduction <add>, %21, %cst_18 [2] : vector<2x8x8xf32> to vector<2x8xf32>
    %23 = vector.shape_cast %22 : vector<2x8xf32> to vector<2x8x1xf32>
    %24 = tpu.reciprocal %23 : vector<2x8x1xf32> -> vector<2x8x1xf32>
    %25 = vector.broadcast %24 : vector<2x8x1xf32> to vector<2x8x8xf32>
    %26 = arith.mulf %21, %25 : vector<2x8x8xf32>
    %27 = vector.shape_cast %2 : vector<1x2x8x16xf32> to vector<2x8x16xf32>
    "tpu.trace_start"() <{level = 10 : i32, message = "bqk,bkd->bqd"}> : () -> ()
    %cst_19 = arith.constant dense<0.000000e+00> : vector<2x8x16xf32>
    %28 = tpu.matmul %26, %27, %cst_19 {dimension_numbers = #tpu.dot_dimension_numbers<[2], [1], [1], [2], [0, 0, 0, 1, 1, 2], [0], [0]>} : vector<2x8x8xf32>, vector<2x8x16xf32>, vector<2x8x16xf32> -> vector<2x8x16xf32>
    "tpu.trace_stop"() : () -> ()
    %29 = vector.shape_cast %26 : vector<2x8x8xf32> to vector<1x2x8x8xf32>
    %c0_20 = arith.constant 0 : index
    %c0_21 = arith.constant 0 : index
    %c0_22 = arith.constant 0 : index
    %c0_23 = arith.constant 0 : index
    %30 = vector.load %arg8[%c0_20, %c0_21, %c0_22, %c0_23] : memref<1x2x8x8xf32, #tpu.memory_space<vmem>>, vector<1x2x8x8xf32>
    tpu.vector_store %arg8[%c0_20, %c0_21, %c0_22, %c0_23], %29 {strides = array<i32>} : memref<1x2x8x8xf32, #tpu.memory_space<vmem>>, vector<1x2x8x8xf32>,
    %31 = vector.shape_cast %28 : vector<2x8x16xf32> to vector<1x2x8x16xf32>
    %c0_24 = arith.constant 0 : index
    %c0_25 = arith.constant 0 : index
    %c0_26 = arith.constant 0 : index
    %c0_27 = arith.constant 0 : index
    %32 = vector.load %arg7[%c0_24, %c0_25, %c0_26, %c0_27] : memref<1x2x8x16xf32, #tpu.memory_space<vmem>>, vector<1x2x8x16xf32>
    tpu.vector_store %arg7[%c0_24, %c0_25, %c0_26, %c0_27], %31 {strides = array<i32>} : memref<1x2x8x16xf32, #tpu.memory_space<vmem>>, vector<1x2x8x16xf32>,
    return
  }
  func.func @transform_0(%arg0: i32, %arg1: i32, %arg2: i32) -> (i32, i32, i32, i32) {
    %c0_i32 = arith.constant 0 : i32
    %c0_i32_0 = arith.constant 0 : i32
    return %arg0, %arg1, %arg2, %c0_i32 : i32, i32, i32, i32
  }
  func.func @transform_1(%arg0: i32, %arg1: i32, %arg2: i32) -> (i32, i32, i32, i32) {
    %c0_i32 = arith.constant 0 : i32
    %c0_i32_0 = arith.constant 0 : i32
    %c0_i32_1 = arith.constant 0 : i32
    return %arg0, %arg1, %c0_i32, %c0_i32_0 : i32, i32, i32, i32
  }
  func.func @transform_2(%arg0: i32, %arg1: i32, %arg2: i32) -> (i32, i32, i32, i32) {
    %c0_i32 = arith.constant 0 : i32
    %c0_i32_0 = arith.constant 0 : i32
    %c0_i32_1 = arith.constant 0 : i32
    return %arg0, %arg1, %c0_i32, %c0_i32_0 : i32, i32, i32, i32
  }
  func.func @transform_3(%arg0: i32, %arg1: i32, %arg2: i32) -> (i32, i32, i32, i32) {
    %c0_i32 = arith.constant 0 : i32
    %c0_i32_0 = arith.constant 0 : i32
    %c0_i32_1 = arith.constant 0 : i32
    return %arg0, %c0_i32, %arg2, %c0_i32_0 : i32, i32, i32, i32
  }
  func.func @transform_4(%arg0: i32, %arg1: i32, %arg2: i32) -> (i32, i32, i32, i32) {
    %c0_i32 = arith.constant 0 : i32
    %c0_i32_0 = arith.constant 0 : i32
    return %arg0, %arg1, %arg2, %c0_i32 : i32, i32, i32, i32
  }
  func.func @transform_5(%arg0: i32, %arg1: i32, %arg2: i32) -> (i32, i32, i32, i32) {
    %c0_i32 = arith.constant 0 : i32
    %c0_i32_0 = arith.constant 0 : i32
    return %arg0, %arg1, %arg2, %c0_i32 : i32, i32, i32, i32
  }
}

</mosaic_0001>

<bundles_post_ra>
// kernel: _sdpa_pallas.1
= control target key start
LH: loop header
LB: loop body
LE: loop exit
PB: predicated region body
PF: predicated region fallthrough
CT: control target
= control target key end

     0   :  { %s1668_s0 = inlined_call_operand.hbm [shape: f32[2,2,8,16], index: 0, kind: input, shape index: {}]   ;;  %s1669_s1 = inlined_call_operand.hbm [shape: f32[2,2,8,16], index: 1, kind: input, shape index: {}]   ;;  %s1670_s2 = inlined_call_operand.hbm [shape: f32[2,2,8,16], index: 2, kind: input, shape index: {}]   ;;  %s1671_s3 = inlined_call_operand.vmem [shape: s8[2,1,8,8], index: 3, kind: input, shape index: {}]   ;;  %s1672_s4 = inlined_call_operand.hbm [shape: f32[2,2,8,16], index: 4, kind: output, shape index: {0}]   ;;  %s1673_s5 = inlined_call_operand.hbm [shape: f32[2,2,8,8], index: 5, kind: output, shape index: {1}]  }
   0x1   :  { %1681 = sst [smem:[#allocation20_spill]] %s1669_s1 }
   0x2   :  { %11 = vsyncpa [#allocation3], 0 }
   0x3   :  { %13 = vsyncpa [#allocation3 + $0x1], 0 }
   0x4   :  { %14 = vsyncpa [#allocation6], 0 }
   0x5   :  { %16 = vsyncpa [#allocation6 + $0x1], 0 }
   0x6   :  { %17 = vsyncpa [#allocation4], 0 }
   0x7   :  { %19 = vsyncpa [#allocation4 + $0x1], 0 }
   0x8   :  { %20 = vsyncpa [#allocation10], 0 }
   0x9   :  { %22 = vsyncpa [#allocation10 + $0x1], 0  ;;  %s1385_s18 = smov 0   ;;  %s1387_s19 = smov 0  }
   0xa   :  { %s1389_s20 = smov 0   ;;  %s1391_s21 = smov 0  }
   0xb   :  { %s1393_s22 = smov 0   ;;  %s1395_s23 = smov 0  }
   0xc LB: > { %1682 = sst [smem:[#allocation15_spill]] %s1321_s18  ;;  %s1416_s24 = sadd.s32 4294967295, %s1341_s23   ;;  %s1341_s23 = sphi %s1395_s23, %s28_s23   ;;  %s1337_s22 = sphi %s1393_s22, %s1701_s22   ;;  %s1333_s21 = sphi %s1391_s21, %s1700_s21   ;;  %s1329_s20 = sphi %s1389_s20, %s1704_s20   ;;  %s1325_s19 = sphi %s1387_s19, %s1703_s19   ;;  %s1321_s18 = sphi %s1385_s18, %s1702_s18  }
   0xd   : > { %1683 = sst [smem:[#allocation16_spill]] %s1337_s22  ;;  %s985_s25 = sadd.s32 4294967294, %s1341_s23  }
   0xe   : > { %s47_s26 = sadd.s32 1, %s1337_s22  ;;  %s58_s27 = sadd.s32 1, %s1329_s20 }
   0xf   : > { %p49_p0 = scmp.ge.s32.totalorder %s47_s26, 2  ;;  %p65_p1 = scmp.ne.s32.totalorder %s1329_s20, %s1325_s19 }
  0x10   : > { %p66_p2 = scmp.eq.s32.totalorder %s1341_s23, 0  ;;  %p71_p3 = scmp.ne.s32.totalorder %s1325_s19, %s1321_s18 }
  0x11   : > { %s1706_s26 = smov (%p49_p0, %s47_s26), 0  ;;  %p72_p5 = scmp.eq.s32.totalorder %s1416_s24, 0 }
  0x12   : > { %1684 = sst [smem:[#allocation17_spill]] %s1706_s26  ;;  %p1428_p4 = por %p66_p2, %p65_p1 }
  0x13   : > { %s51_s29 = ssub.s32 %s1337_s22, %s1706_s26  ;;  %p183_p6 = scmp.eq.s32.totalorder %s1416_s24, 1 }
  0x14   : > { %p56_p7 = scmp.eq.s32.totalorder %s51_s29, 0  ;;  %p1436_p8 = por %p72_p5, %p71_p3 }
  0x15   : > { %p1440_p9 = por %p183_p6, %p65_p1  ;;  %p189_p10 = scmp.eq.s32.totalorder %s985_s25, 1 }
  0x16   : > { %s1445_s7 = scalar_select %p56_p7, %s1329_s20, %s58_s27  }
  0x17   : > { %p1447_p11 = por %p189_p10, %p71_p3  ;;  %p1078_p13 = scmp.lt.s32.totalorder %s1341_s23, 2 }
  0x18   : > { %1688 = sst [smem:[#allocation18_spill]] %s1445_s7  ;;  %s1674_s9 = sand.u32 1, %s1329_s20  }
  0x19   : > { %s1689_s8 = scalar_select %p1447_p11, 1, 0 }
  0x1a   : > { %s1456_s10 = sshll.u32 %s1674_s9, 4  ;;  %s1459_s11 = sshll.u32 %s1337_s22, 8 }
  0x1b   : > { %1690 = sst [smem:[#allocation19_spill]] %s1689_s8  ;;  %p1463_p0 = pnand %p1078_p13, %p1428_p4 }
  0x1c   : > { %s263_s13 = sand.u32 1, %s1341_s23   ;;  %s1692_s1 = sld [smem:[#allocation20_spill]] }
  0x1d   : > { %s267_s17 = scalar_lea.vmem [#allocation5], %s1456_s10  ;;  %p997_p1 = scmp.ge.s32.totalorder %s1341_s23, 1 }
  0x1e   : > { %s276_s25 = sshll.u32 %s267_s17, 4  ;;  %p317_p2 = scmp.lt.s32.totalorder %s1341_s23, 3  ;;  %s277_s25 = int_to_ptr.vmem [resolvable:$true] %s276_s25 }
  0x1f   : > { %s1475_s27 = scalar_lea.sflag [#allocation6], %s263_s13  ;;  %p1145_p3 = pneg %p1463_p0 }
  0x20   : > { %s1156_s28 = scalar_lea.vmem %s277_s25, 256  ;;  %s1343_s29 = smov [#allocation5]  }
  0x21   : > { %p1157_p4 = scmp.ne.s32.totalorder %s277_s25, %s1156_s28  ;;  %s1161_s9 = sshll.u32 %s1343_s29, 4  ;;  %s1162_s9 = int_to_ptr.vmem [resolvable:$false] %s1161_s9 }
  0x22   : > { %s275_s16 = scalar_lea.hbm %s1692_s1, %s1459_s11  ;;  %s1163_s14 = scalar_lea.vmem %s1162_s9, 512 }
  0x23   : > { %p1159_p5 = pnand %p1157_p4, %p1145_p3  ;;  %p1164_p7 = scmp.lt.s32.totalorder %s277_s25, %s1162_s9 }
  0x24   : > { %p1165_p10 = scmp.lt.s32.totalorder %s1163_s14, %s1156_s28 }
  0x25   : > { %p1160_p6 = pneg %p1159_p5 }
  0x26   : > { %p1166_p13 = por %p1165_p10, %p1164_p7 }
  0x28   : > { %p1167_p12 = pnand %p1166_p13, %p1160_p6 }
  0x2a   : > { %1170 = shalt.err (!%p1167_p12)
}
  0x2b   : > { %s1679_s15 = smov 128   ;;  %s1345_s13 = smov 8  }
  0x2c   : > { %1067 = dma.hbm_to_vmem [thread:$0]  (!%p1463_p0), %s275_s16, 256, %s277_s25, %s1475_s27, %s1679_s15, %s1679_s15, %s1345_s13  }
  0x2d   : > { %p1492_p4 = pnand %p997_p1, %p317_p2  ;;  %s252_s29 = scalar_lea.hbm %s1668_s0, %s1459_s11 }
  0x2e   : > { %s243_s14 = scalar_lea.vmem [#allocation2], %s1456_s10  ;;  %s298_s7 = scalar_lea.hbm %s1670_s2, %s1459_s11 }
  0x2f   : > { %s253_s1 = sshll.u32 %s243_s14, 4  ;;  %s1694_s8 = sand.u32 1, %s1329_s20   ;;  %s254_s1 = int_to_ptr.vmem [resolvable:$true] %s253_s1 }
  0x30   : > { %s240_s18 = scalar_lea.sflag [#allocation3], %s1694_s8  ;;  %s1184_s16 = scalar_lea.vmem %s254_s1, 256 }
  0x31   : > { %p1185_p12 = scmp.ne.s32.totalorder %s254_s1, %s1184_s16  ;;  %s1346_s25 = smov [#allocation2]  }
  0x32   : > { %s1189_s15 = sshll.u32 %s1346_s25, 4  ;;  %s1190_s15 = int_to_ptr.vmem [resolvable:$false] %s1189_s15 }
  0x33   : > { %p1187_p1 = pnand %p1185_p12, %p1145_p3  ;;  %s1191_s17 = scalar_lea.vmem %s1190_s15, 512 }
  0x34   : > { %p1192_p5 = scmp.lt.s32.totalorder %s254_s1, %s1190_s15  ;;  %p1193_p6 = scmp.lt.s32.totalorder %s1191_s17, %s1184_s16 }
  0x35   : > { %p1188_p2 = pneg %p1187_p1 }
  0x36   : > { %p1194_p7 = por %p1193_p6, %p1192_p5 }
  0x38   : > { %p1195_p10 = pnand %p1194_p7, %p1188_p2 }
  0x3a   : > { %1198 = shalt.err (!%p1195_p10)
}
  0x3b   : > { %s1695_s22 = smov 128   ;;  %s290_s26 = scalar_lea.vmem [#allocation7], %s1456_s10 }
  0x3c   : > { %1064 = dma.hbm_to_vmem [thread:$0]  (!%p1463_p0), %s252_s29, 256, %s254_s1, %s240_s18, %s1695_s22, %s1695_s22, %s1345_s13  }
  0x3d   : > { %s299_s8 = sshll.u32 %s290_s26, 4  ;;  %s1347_s15 = smov [#allocation7]   ;;  %s300_s8 = int_to_ptr.vmem [resolvable:$true] %s299_s8 }
  0x3e   : > { %s1212_s28 = scalar_lea.vmem %s300_s8, 256  ;;  %s1217_s14 = sshll.u32 %s1347_s15, 4  ;;  %s1218_s14 = int_to_ptr.vmem [resolvable:$false] %s1217_s14 }
  0x3f   : > { %p1213_p13 = scmp.ne.s32.totalorder %s300_s8, %s1212_s28  ;;  %s1219_s16 = scalar_lea.vmem %s1218_s14, 512 }
  0x40   : > { %p1220_p2 = scmp.lt.s32.totalorder %s300_s8, %s1218_s14  ;;  %p1221_p5 = scmp.lt.s32.totalorder %s1219_s16, %s1212_s28 }
  0x41   : > { %p1215_p12 = pnand %p1213_p13, %p1145_p3 }
  0x42   : > { %p1222_p6 = por %p1221_p5, %p1220_p2 }
  0x43   : > { %p1216_p1 = pneg %p1215_p12 }
  0x45   : > { %p1223_p7 = pnand %p1222_p6, %p1216_p1 }
  0x47   : > { %1226 = shalt.err (!%p1223_p7)
}
  0x48   : > { %1070 = dma.hbm_to_vmem [thread:$0]  (!%p1463_p0), %s298_s7, 256, %s300_s8, %s1475_s27, %s1695_s22, %s1695_s22, %s1345_s13  }
  0x49   : > { %321 = sbr.rel (%p1492_p4) target bundleno = 805 (0x325), region = 36  ;;  %s1533_s10 = sand.u32 (!%p1492_p4), 1, %s1325_s19  }
  0x4a   : > { %s1536_s12 = sshll.u32 (!%p1492_p4), %s1533_s10, 4  ;;  %s324_s29 = scalar_lea.sflag (!%p1492_p4), [#allocation3], %s1533_s10 }
  0x4b   : > { %s327_s25 = scalar_lea.vmem (!%p1492_p4), [#allocation2], %s1536_s12 }
  0x4e   : > { %1304 = dma.done.wait (%p1436_p8), %s324_s29, 256  }
  0x4f   : > { %1306 = vsyncadd (%p1436_p8), %s324_s29, 4294967040  ;;  %s332_s7 = sand.u32 1, %s1416_s24   ;;  %s336_s27 = scalar_lea.vmem [#allocation5], %s1536_s12 }
  0x50   : > { %s333_s11 = scalar_lea.sflag [#allocation6], %s332_s7 }
  0x51   : > { %1308 = dma.done.wait (%p1436_p8), %s333_s11, 512  }
  0x52   : > { %1310 = vsyncadd (%p1436_p8), %s333_s11, 4294966784  ;;  %v1348_v0 = vmov 0.0   ;;  %vm1349_vm0 = vmmov 0   ;;  %vm416_vm1 = vcmask 130048   ;;  %v410_v1 = vld [vmem:[%s336_s27] sm:$0xff]  ;;  %v411_v2 = vld [vmem:[%s336_s27 + $0x8] sm:$0xff] }
  0x53   : > { %1031 = vmatprep.subr.mxu0 %v1348_v0  ;;  %1036 = vmatprep.subr.mxu1 %v1348_v0  ;;  %v408_v3 = vld [vmem:[%s327_s25] sm:$0xff]  ;;  %v409_v5 = vld [vmem:[%s327_s25 + $0x8] sm:$0xff]  ;;  %p397_p8 = scmp.lt.s32.totalorder %s1333_s21, 1  ;;  %v1350_v8 = vmov 0   ;;  %vm578_vm4 = vcmask 64512   ;;  %s345_s22 = scalar_lea.vmem [#allocation7], %s1536_s12 }
  0x54   : > { %1033 = vmatprep.mubr.msk.f32.mxu0 %vm1349_vm0, %v1348_v0  ;;  %1038 = vmatprep.mubr.msk.f32.mxu1 %vm1349_vm0, %v1348_v0  ;;  %v414_v4 = vmul.f32 0.25, %v408_v3  ;;  %v415_v6 = vmul.f32 0.25, %v409_v5  ;;  %v412_v29 = vld [vmem:[%s345_s22] sm:$0xff]  ;;  %v413_v30 = vld [vmem:[%s345_s22 + $0x8] sm:$0xff]  ;;  %s393_s26 = scalar_lea.vmem [#allocation9], %s1536_s12  ;;  %s1021_s8 = sshll.u32 %s1333_s21, 8 }
  0x55   : > { %1032 = vmatpush3.xpose.msk.msra.mxu0 %vm416_vm1, %v410_v1  ;;  %1037 = vmatpush3.xpose.msk.msra.mxu1 %vm416_vm1, %v411_v2  ;;  %s398_s24 = scalar_select %p397_p8, %s1333_s21, 1 }
  0x56   : > { %1041 = vmatprep.subr.mxu0 %v1348_v0  ;;  %1046 = vmatprep.subr.mxu1 %v1348_v0  ;;  %s792_s28 = sshll.u32 %s393_s26, 4  ;;  %s1579_s16 = scalar_lea.hbm %s1673_s5, %s1021_s8  ;;  %s1581_s28 = int_to_ptr.vmem [resolvable:$true] %s792_s28 }
  0x57   : > { %s1003_s30 = sshll.u32 %s398_s24, 1  ;;  %s757_s1 = scalar_lea.sflag [#allocation10], %s1533_s10 }
  0x58   : > { %1034 = vmatmul.mubr.msk.f32.vlgmr.msra.gmra.mxu0 %vm416_vm1, %v414_v4  ;;  %1039 = vmatmul.mubr.msk.f32.vlgmr.msra.gmra.mxu1 %vm416_vm1, %v415_v6  ;;  %s403_s17 = scalar_lea.vmem %s1671_s3, %s1003_s30  ;;  %s1227_s18 = scalar_lea.vmem %s1581_s28, 256 }
  0x59   : > { %1043 = vmatprep.mubr.msk.f32.mxu0 %vm1349_vm0, %v1348_v0  ;;  %1048 = vmatprep.mubr.msk.f32.mxu1 %vm1349_vm0, %v1348_v0  ;;  %v569_v7 = vld [vmem:[%s403_s17] sm:$0x3]  ;;  %p1228_p0 = scmp.ne.s32.totalorder %s1581_s28, %s1227_s18  ;;  %s1351_s29 = smov [#allocation9]  }
  0x5a   : > { %vm570_vm2 = vnez %v569_v7  ;;  %1042 = vmatpush3.msra.mxu0 %v412_v29  ;;  %1047 = vmatpush3.msra.mxu1 %v413_v30  ;;  %s1231_s25 = sshll.u32 %s1351_s29, 4  ;;  %s1232_s25 = int_to_ptr.vmem [resolvable:$false] %s1231_s25 }
  0x5b   : > { %v571_v9 = vsel %vm570_vm2, 16843009, %v1350_v8  ;;  %p1229_p3 = pnand %p1228_p0, %p1440_p9  ;;  %s1233_s7 = scalar_lea.vmem %s1232_s25, 512 }
  0x5c   : > { %v572_v10 = vunpack.c.0.s8 %v571_v9  ;;  %p1234_p10 = scmp.lt.s32.totalorder %s1581_s28, %s1232_s25  ;;  %p1235_p13 = scmp.lt.s32.totalorder %s1233_s7, %s1227_s18 }
  0x5d   : > { %p1230_p4 = pneg %p1229_p3 }
  0x5e   : > { %vm573_vm3 = vcmp.ne.s32.totalorder %v572_v10, 0  ;;  %p1236_p12 = por %p1235_p13, %p1234_p10 }
  0x60   : > { %p1237_p1 = pnand %p1236_p12, %p1230_p4 }
 0x118   : > { %v489_v11 = vpop.f32.mrf.mxu0  ;;  %v565_v12 = vpop.f32.mrf.mxu1 }
 0x119   : > { %v576_v13 = vsel %vm573_vm3, %v489_v11, -1e+09  ;;  %v577_v14 = vsel %vm573_vm3, %v565_v12, -1e+09 }
 0x11a   : > { %v1035_v15 = vpop.f32.mrf.mxu0  ;;  %v579_v16 = vsel %vm578_vm4, %v576_v13, -inf  ;;  %v1040_v17 = vpop.f32.mrf.mxu1  ;;  %v582_v18 = vsel %vm578_vm4, %v577_v14, -inf }
 0x11b   : > { %580 = vmax.xlane.f32.xlu0 %v579_v16 }
 0x11f   : > { %583 = vmax.xlane.f32.xlu0 %v582_v18 }
 0x1a4   : > { %v581_v19 = vpop.xlane.xlu0 %580 }
 0x1a5   : > { %v585_v20 = vsub.f32 %v576_v13, %v581_v19 }
 0x1a7   : > { %v587_v21 = vmul.f32 1.442695, %v585_v20 }
 0x1a8   : > { %v584_v22 = vpop.xlane.xlu0 %583 }
 0x1a9   : > { %1135 = vpow2.f32 %v587_v21  ;;  %v586_v23 = vsub.f32 %v577_v14, %v584_v22 }
 0x1ab   : > { %v589_v24 = vmul.f32 1.442695, %v586_v23 }
 0x1ad   : > { %1137 = vpow2.f32 %v589_v24 }
 0x1b6   : > { %v1136_v25 = vpop.eup %1135 }
 0x1b7   : > { %v591_v26 = vsel %vm578_vm4, %v1136_v25, 0.0 }
 0x1b8   : > { %592 = vadd.xlane.f32.xlu1 %v591_v26 }
 0x1ba   : > { %v1138_v27 = vpop.eup %1137 }
 0x1bb   : > { %v594_v28 = vsel %vm578_vm4, %v1138_v27, 0.0 }
 0x1bc   : > { %595 = vadd.xlane.f32.xlu1 %v594_v28 }
 0x241   : > { %v593_v31 = vpop.xlane.xlu1 %592 }
 0x242   : > { %1139 = vrcp.f32 %v593_v31 }
 0x245   : > { %v596_v32 = vpop.xlane.xlu1 %595 }
 0x246   : > { %1141 = vrcp.f32 %v596_v32 }
 0x24f   : > { %v1140_v33 = vpop.eup %1139 }
 0x250   : > { %v599_v34 = vmul.f32 %v1140_v33, %v1136_v25 }
 0x252   : > { %1044 = vmatmul.mubr.msk.f32.vlgmr.msra.gmra.mxu0 %vm578_vm4, %v599_v34  ;;  %747 = vst.msk [vmem:[%s393_s26] sm:$0xff] %vm578_vm4, %v599_v34 }
 0x253   : > { %v1142_v35 = vpop.eup %1141 }
 0x254   : > { %v600_v36 = vmul.f32 %v1142_v35, %v1138_v27 }
 0x256   : > { %1049 = vmatmul.mubr.msk.f32.vlgmr.msra.gmra.mxu1 %vm578_vm4, %v600_v36  ;;  %748 = vst.msk [vmem:[%s393_s26 + $0x8] sm:$0xff] %vm578_vm4, %v600_v36 }
 0x257   : > { %1240 = shalt.err (!%p1237_p1)
}
 0x258   : > { %s1241_s11 = scalar_lea.hbm %s1579_s16, 256  ;;  %s1245_s30 = scalar_lea.hbm %s1673_s5, 512 }
 0x259   : > { %p1242_p2 = scmp.ne.s32.totalorder %s1579_s16, %s1241_s11  ;;  %p1246_p7 = scmp.lt.s32.totalorder %s1579_s16, %s1673_s5 }
 0x25a   : > { %p1247_p8 = scmp.lt.s32.totalorder %s1245_s30, %s1241_s11 }
 0x25b   : > { %p1243_p5 = pnand %p1242_p2, %p1440_p9 }
 0x25c   : > { %p1248_p0 = por %p1247_p8, %p1246_p7 }
 0x25d   : > { %p1244_p6 = pneg %p1243_p5 }
 0x25f   : > { %p1249_p3 = pnand %p1248_p0, %p1244_p6 }
 0x261   : > { %1252 = shalt.err (!%p1249_p3)
}
 0x262   : > { %s1352_s17 = smov 128   ;;  %s1353_s22 = smov 8  }
 0x263   : > { %1058 = dma.vmem_to_hbm [thread:$0]  (%p1440_p9), %s1581_s28, 256, %s1579_s16, %s757_s1, %s1352_s17, %s1352_s17, %s1353_s22  }
 0x264   : > { %s386_s26 = scalar_lea.vmem [#allocation8], %s1536_s12  ;;  %s1618_s29 = scalar_lea.hbm %s1672_s4, %s1021_s8 }
 0x265   : > { %s773_s15 = sshll.u32 %s386_s26, 4  ;;  %s752_s12 = scalar_lea.sflag [#allocation4], %s1533_s10  ;;  %s1611_s15 = int_to_ptr.vmem [resolvable:$true] %s773_s15 }
 0x266   : > { %s1253_s28 = scalar_lea.vmem %s1611_s15, 256  ;;  %s1354_s16 = smov [#allocation8]  }
 0x267   : > { %p1254_p4 = scmp.ne.s32.totalorder %s1611_s15, %s1253_s28  ;;  %s1257_s1 = sshll.u32 %s1354_s16, 4  ;;  %s1258_s1 = int_to_ptr.vmem [resolvable:$false] %s1257_s1 }
 0x268   : > { %s1259_s25 = scalar_lea.vmem %s1258_s1, 512  ;;  %p1260_p12 = scmp.lt.s32.totalorder %s1611_s15, %s1258_s1 }
 0x269   : > { %p1255_p10 = pnand %p1254_p4, %p1440_p9  ;;  %p1261_p1 = scmp.lt.s32.totalorder %s1259_s25, %s1253_s28 }
 0x26b   : > { %p1256_p13 = pneg %p1255_p10  ;;  %p1262_p2 = por %p1261_p1, %p1260_p12 }
 0x26d   : > { %p1263_p5 = pnand %p1262_p2, %p1256_p13 }
 0x312   : > { %v670_v37 = vpop.f32.mrf.mxu0 }
 0x313   : > { %749 = vst.msk [vmem:[%s386_s26] sm:$0xff] %vm416_vm1, %v670_v37 }
 0x314   : > { %v1045_v38 = vpop.f32.mrf.mxu0 }
 0x316   : > { %v743_v39 = vpop.f32.mrf.mxu1 }
 0x317   : > { %750 = vst.msk [vmem:[%s386_s26 + $0x8] sm:$0xff] %vm416_vm1, %v743_v39 }
 0x318   : > { %v1050_v40 = vpop.f32.mrf.mxu1 }
 0x319   : > { %1266 = shalt.err (!%p1263_p5)
}
 0x31a   : > { %s1267_s21 = scalar_lea.hbm %s1618_s29, 256  ;;  %s1271_s7 = scalar_lea.hbm %s1672_s4, 512 }
 0x31b   : > { %p1268_p6 = scmp.ne.s32.totalorder %s1618_s29, %s1267_s21  ;;  %p1272_p0 = scmp.lt.s32.totalorder %s1618_s29, %s1672_s4 }
 0x31c   : > { %p1273_p3 = scmp.lt.s32.totalorder %s1271_s7, %s1267_s21 }
 0x31d   : > { %p1269_p7 = pnand %p1268_p6, %p1440_p9 }
 0x31e   : > { %p1274_p4 = por %p1273_p3, %p1272_p0 }
 0x31f   : > { %p1270_p8 = pneg %p1269_p7 }
 0x321   : > { %p1275_p10 = pnand %p1274_p4, %p1270_p8 }
 0x323   : > { %1278 = shalt.err (!%p1275_p10)
}
 0x324   : > { %1057 = dma.vmem_to_hbm [thread:$0]  (%p1440_p9), %s1611_s15, 256, %s1618_s29, %s752_s12, %s1352_s17, %s1352_s17, %s1353_s22  }
 0x325 PF: > { %s1696_s24 = sld [smem:[#allocation15_spill]]  ;;  %p1698_p13 = scmp.ge.s32.totalorder %s1341_s23, 2 }
 0x327   : > { %p1072_p12 = pnand %p1698_p13, %p1447_p11 }
 0x329   : > { %p1073_p1 = pneg %p1072_p12 }
 0x32b   : > { %s807_s13 = sand.u32 1, %s1696_s24  }
 0x32c   : > { %s808_s9 = scalar_lea.sflag [#allocation4], %s807_s13 }
 0x32d   : > { %1312 = dma.done.wait (%p1073_p1), %s808_s9, 256  }
 0x32e   : > { %1314 = vsyncadd (%p1073_p1), %s808_s9, 4294967040  ;;  %s817_s26 = scalar_lea.sflag [#allocation10], %s807_s13 }
 0x32f   : > { %1316 = dma.done.wait (%p1073_p1), %s817_s26, 256  }
 0x330   : > { %1318 = vsyncadd (%p1073_p1), %s817_s26, 4294967040  ;;  %s28_s23 = sadd.s32 1, %s1341_s23   ;;  %s1699_s6 = sld [smem:[#allocation18_spill]] }
 0x331   : > { %p25_p2 = scmp.ge.s32.totalorder %s28_s23, 4   ;;  %s1700_s21 = sld [smem:[#allocation16_spill]] }
 0x332   : > { %s1701_s22 = sld [smem:[#allocation17_spill]]  ;;  %s1702_s18 = smov %s1325_s19 }
 0x333   : > { %s1703_s19 = smov %s1329_s20  ;;  %27 = sbr.rel (!%p25_p2) target bundleno = 12 (0xc), region = 125 }
 0x336   : > { %s1704_s20 = smov %s1699_s6 }
 0x338   :  { %822 = vsyncpa [#allocation3], 1 }
 0x339   :  { %824 = vsyncpa [#allocation3 + $0x1], 1 }
 0x33a   :  { %825 = vsyncpa [#allocation6], 1 }
 0x33b   :  { %827 = vsyncpa [#allocation6 + $0x1], 1 }
 0x33c   :  { %828 = vsyncpa [#allocation4], 1 }
 0x33d   :  { %830 = vsyncpa [#allocation4 + $0x1], 1 }
 0x33e   :  { %831 = vsyncpa [#allocation10], 1 }
 0x33f   :  { %833 = vsyncpa [#allocation10 + $0x1], 1 }

</bundles_post_ra>
